<compile_context>
chip_gen: v5e
topology: v5e:2x2
jax: 0.10.0
libtpu: 0.0.40
codegen_flags: <defaults>
</compile_context>

<pallas_src>
import datetime
from functools import partial

import jax
import jax.numpy as jnp
from jax.experimental import pallas as pl
from jax.experimental.pallas import tpu as pltpu

# Per-tile VMEM budget: ~2 MiB per buffer -> with double-buffered in + out
# (4 buffers) stays ~8 MiB, well under v7x's 32 MiB default scoped VMEM.
_TILE_BYTES_BUDGET = 2 * 1024 * 1024


def _base_forward_kernel(x_ref, o_ref):
    # BaseModel declares no layers; its forward() performs no tensor compute.
    # TODO(synk): PyTorch forward() logs an error and returns None; the
    # identity pass-through is the only meaningful on-device equivalent.
    o_ref[...] = x_ref[...]


def _pick_row_tile(rows: int, cols: int, itemsize: int) -> int:
    """Largest multiple-of-8 divisor of `rows` whose (tile, cols) slab fits the budget."""
    if rows <= 8 or rows % 8 != 0:
        # Full-extent block keeps the (8,128) BlockSpec rule satisfied for odd shapes.
        return rows
    cap = (_TILE_BYTES_BUDGET // max(cols * itemsize, 1)) // 8 * 8
    tile = max(8, min(rows, cap))
    while rows % tile != 0:  # rows % 8 == 0, so this terminates at tile == 8 at worst
        tile -= 8
    return tile


@partial(jax.jit, donate_argnums=(0,))
def base_model_forward(x_nchw: jax.Array) -> jax.Array:
    """Parameter-free pass-through corresponding to BaseModel's (empty) forward.

    Flattens NCHW to a lane-dense (N*C, H*W) slab, tiles over rows so the
    copy is pipelined (overlapped in/out DMA), and aliases input to output so
    no extra HBM buffer is written when the input is donated.
    """
    n, c, h, w = x_nchw.shape
    rows, cols = n * c, h * w
    x2d = x_nchw.reshape(rows, cols)

    tile_r = _pick_row_tile(rows, cols, jnp.dtype(x2d.dtype).itemsize)
    grid = (rows // tile_r,)

    out2d = pl.pallas_call(
        _base_forward_kernel,
        out_shape=jax.ShapeDtypeStruct((rows, cols), x2d.dtype),
        grid=grid,
        in_specs=[pl.BlockSpec((tile_r, cols), lambda i: (i, 0))],
        out_specs=pl.BlockSpec((tile_r, cols), lambda i: (i, 0)),
        input_output_aliases={0: 0},
        compiler_params=pltpu.CompilerParams(
            dimension_semantics=("parallel",),
        ),
    )(x2d)

    return out2d.reshape(n, c, h, w)


class BaseModelPallas:
    """Host-side metadata mirror of BaseModel (no parameters, abstract build)."""

    def __init__(self, name: str | None = None) -> None:
        self.model_name: str = name if name is not None else "Default"
        self.creation_date: str = f"{datetime.datetime.now():%Y-%m-%d-%H-%M-%S}"
        self.num_iterations_trained: int = 0
        self._params: list[jax.Array] = []  # BaseModel registers no parameters

    def build(self) -> "BaseModelPallas":
        # TODO(synk): abstract in PyTorch; nothing to build in the base class.
        return self

    def forward(self, x_nchw: jax.Array) -> jax.Array:
        return base_model_forward(x_nchw)

    def numModuleParameters(self, trainable_only: bool = False) -> int:
        return sum(int(p.size) for p in self._params)

    def __repr__(self) -> str:
        return (
            f"<instance of class: {self.__class__.__name__} \n"
            f"\t model name: {self.model_name} \n"
            f"\t created on: {self.creation_date} \n"
            f"\t trained for: {self.num_iterations_trained} iterations\n>"
        )

    # TODO(synk): load()/save() (.pt checkpoints) and exportTorchScript() have
    # no Pallas/JAX-kernel equivalent and are intentionally not reproduced.


if __name__ == "__main__":
    key = jax.random.PRNGKey(0)
    shape = (2, 4, 16, 16)  # small NCHW input consistent with renderer-driven usage
    x = jax.random.normal(key, shape, dtype=jnp.float32)
    # x is donated to the (input/output-aliased) kernel; keep an identically
    # generated reference buffer for the correctness check.
    x_expected = jax.random.normal(key, shape, dtype=jnp.float32)

    model = BaseModelPallas(name="Default").build()
    y = model.forward(x)
    y = jax.block_until_ready(y)

    assert y.shape == shape and y.dtype == jnp.float32
    assert bool(jnp.allclose(y, x_expected))
    assert model.numModuleParameters() == 0

    print("KERNEL_OK")
</pallas_src>

<mosaic_0001>
module attributes {stable_mosaic.version = 11 : i64} {
  func.func @_base_forward_kernel(%arg0: i32, %arg1: memref<8x256xf32, #tpu.memory_space<vmem>>, %arg2: memref<8x256xf32, #tpu.memory_space<vmem>>) attributes {dimension_semantics = [#tpu.dimension_semantics<parallel>], iteration_bounds = array<i64: 1>, scalar_prefetch = 0 : i64, scratch_operands = 0 : i64, tpu.core_type = #tpu.core_type<tc>, window_params = [{transform_indices = @transform_0, window_bounds = array<i64: 8, 256>}, {transform_indices = @transform_1, window_bounds = array<i64: 8, 256>}]} {
    %c0 = arith.constant 0 : index
    %c0_0 = arith.constant 0 : index
    %0 = vector.load %arg1[%c0, %c0_0] : memref<8x256xf32, #tpu.memory_space<vmem>>, vector<8x256xf32>
    %c0_1 = arith.constant 0 : index
    %c0_2 = arith.constant 0 : index
    %1 = vector.load %arg2[%c0_1, %c0_2] : memref<8x256xf32, #tpu.memory_space<vmem>>, vector<8x256xf32>
    tpu.vector_store %arg2[%c0_1, %c0_2], %0 {strides = array<i32>} : memref<8x256xf32, #tpu.memory_space<vmem>>, vector<8x256xf32>,
    return
  }
  func.func @transform_0(%arg0: i32) -> (i32, i32) {
    %c0_i32 = arith.constant 0 : i32
    %c0_i32_0 = arith.constant 0 : i32
    return %arg0, %c0_i32 : i32, i32
  }
  func.func @transform_1(%arg0: i32) -> (i32, i32) {
    %c0_i32 = arith.constant 0 : i32
    %c0_i32_0 = arith.constant 0 : i32
    return %arg0, %c0_i32 : i32, i32
  }
}

</mosaic_0001>

<bundles_post_ra>
// kernel: base_model_forward.1
= control target key start
LH: loop header
LB: loop body
LE: loop exit
PB: predicated region body
PF: predicated region fallthrough
CT: control target
= control target key end

     0   :  { %s38_s0 = inlined_call_operand.vmem [shape: f32[8,256], index: 0, kind: input, shape index: {}, may-alias: {0,1}]   ;;  %s39_s1 = inlined_call_operand.vmem [shape: f32[8,256], index: 1, kind: output, shape index: {}, may-alias: {0,1}]  }
   0x1   :  { %v8_v0 = vld [vmem:[%s38_s0] sm:$0xff]  ;;  %v9_v1 = vld [vmem:[%s38_s0 + $0x8] sm:$0xff] }
   0x2   :  { %10 = vst [vmem:[%s39_s1] sm:$0xff] %v8_v0 }
   0x3   :  { %11 = vst [vmem:[%s39_s1 + $0x8] sm:$0xff] %v9_v1 }

</bundles_post_ra>
